<compile_context>
chip_gen: v7x
topology: tpu7x:2x2x1
jax: 0.10.0
libtpu: 0.0.40
codegen_flags: <defaults>
</compile_context>

<pallas_src>
import functools

import numpy as np
import jax
import jax.numpy as jnp
from jax import lax
from jax.experimental import pallas as pl
from jax.experimental.pallas import tpu as pltpu


def _round_up(x, m):
    return (x + m - 1) // m * m


# ----------------------------------------------------------------------------- #
# Fused kernel: (folded) spatial embedding + LSTM recurrence + MLP classifier.
# Everything fits in VMEM (< 100 KiB), so a single gridless invocation.
# ----------------------------------------------------------------------------- #
def _discriminator_kernel(traj_ref,   # (S*B, 2)   time-major, flattened
                          w_ref,      # (R, C)     packed weight slab
                          v_ref,      # (5, C)     packed bias/scale slab
                          out_ref,    # (B, 1)
                          *, seq_len, batch, h_dim, mlp_dim):
    four_h = 4 * h_dim
    # 8-row-aligned segment offsets inside the weight slab.
    r_whh = _round_up(2, 8)
    r_w1 = r_whh + _round_up(h_dim, 8)
    r_w2 = r_w1 + _round_up(h_dim, 8)

    w_x = w_ref[0:2, :four_h]                      # (2, 4h)  = w_emb @ w_ih (folded offline)
    w_hh = w_ref[r_whh:r_whh + h_dim, :four_h]     # (h, 4h)
    w1 = w_ref[r_w1:r_w1 + h_dim, :mlp_dim]        # (h, mlp)
    w2_row = w_ref[r_w2:r_w2 + 1, :mlp_dim]        # (1, mlp)

    b_x = v_ref[0:1, :four_h]                      # (1, 4h) = b_emb@w_ih + b_ih + b_hh
    b1 = v_ref[1:2, :mlp_dim]
    g1 = v_ref[2:3, :mlp_dim]
    be1 = v_ref[3:4, :mlp_dim]
    b2 = v_ref[4:5, 0:1]
    g2 = v_ref[4:5, 1:2]
    be2 = v_ref[4:5, 2:3]

    # ---- All timestep input projections as VPU broadcast MACs (K=2 contraction). ----
    traj = traj_ref[...]                                              # (S*B, 2)
    gates_x = (traj[:, 0:1] * w_x[0:1, :]
               + traj[:, 1:2] * w_x[1:2, :]
               + b_x)                                                 # (S*B, 4h)

    h = jnp.zeros((batch, h_dim), jnp.float32)
    c = jnp.zeros((batch, h_dim), jnp.float32)

    # Fully unrolled recurrence (seq_len static & small). One MXU matmul + one add per
    # step on the serial critical path; slices are static & sublane-aligned (batch=8k).
    for t in range(seq_len):
        gates = gates_x[t * batch:(t + 1) * batch, :] + jnp.dot(
            h, w_hh, preferred_element_type=jnp.float32)              # (B, 4h)
        # Whole-vreg EUP activations, then static gate slices (PyTorch order i,f,g,o).
        sig = jax.nn.sigmoid(gates)
        tnh = jnp.tanh(gates)
        i_g = sig[:, 0 * h_dim:1 * h_dim]
        f_g = sig[:, 1 * h_dim:2 * h_dim]
        g_g = tnh[:, 2 * h_dim:3 * h_dim]
        o_g = sig[:, 3 * h_dim:4 * h_dim]
        c = f_g * c + i_g * g_g
        h = o_g * jnp.tanh(c)

    # ---- real_classifier: Linear -> BN(batch stats) -> ReLU -> Linear(mlp,1) -> BN(1) -> ReLU
    eps = 1e-5
    y = jnp.dot(h, w1, preferred_element_type=jnp.float32) + b1       # (B, mlp)
    m1 = jnp.mean(y, axis=0, keepdims=True)
    v1 = jnp.mean((y - m1) ** 2, axis=0, keepdims=True)               # biased variance
    y = (y - m1) * lax.rsqrt(v1 + eps) * g1 + be1
    y = jnp.maximum(y, 0.0)

    # N=1 output column: VPU multiply + XLU cross-lane reduce.
    z = jnp.sum(y * w2_row, axis=-1, keepdims=True) + b2              # (B, 1)
    m2 = jnp.mean(z, axis=0, keepdims=True)
    v2 = jnp.mean((z - m2) ** 2, axis=0, keepdims=True)
    z = (z - m2) * lax.rsqrt(v2 + eps) * g2 + be2
    out_ref[...] = jnp.maximum(z, 0.0)


def _vmem_spec():
    return pl.BlockSpec(memory_space=pltpu.MemorySpace.VMEM)


# ----------------------------------------------------------------------------- #
# One-time offline parameter packing (host-side, NOT inside the jitted wrapper).
# ----------------------------------------------------------------------------- #
def pack_params(p):
    h_dim = p["w_hh"].shape[0]
    mlp_dim = p["w1"].shape[1]
    four_h = 4 * h_dim
    cols = max(four_h, mlp_dim)

    w_emb = np.asarray(p["w_emb"], np.float32)
    b_emb = np.asarray(p["b_emb"], np.float32)
    w_ih = np.asarray(p["w_ih"], np.float32)
    # Offline fold of the input projection:
    #   (x@w_emb + b_emb)@w_ih + b_ih + b_hh == x@(w_emb@w_ih) + (b_emb@w_ih + b_ih + b_hh)
    w_x = w_emb @ w_ih                                                       # (2, 4h)
    b_x = b_emb @ w_ih + np.asarray(p["b_ih"], np.float32) \
        + np.asarray(p["b_hh"], np.float32)                                  # (1, 4h)

    r_whh = _round_up(2, 8)
    r_w1 = r_whh + _round_up(h_dim, 8)
    r_w2 = r_w1 + _round_up(h_dim, 8)
    rows = r_w2 + 8

    w_slab = np.zeros((rows, cols), np.float32)
    w_slab[0:2, :four_h] = w_x
    w_slab[r_whh:r_whh + h_dim, :four_h] = np.asarray(p["w_hh"], np.float32)
    w_slab[r_w1:r_w1 + h_dim, :mlp_dim] = np.asarray(p["w1"], np.float32)
    w_slab[r_w2, :mlp_dim] = np.asarray(p["w2"], np.float32).reshape(-1)     # col -> row

    v_slab = np.zeros((5, cols), np.float32)
    v_slab[0, :four_h] = b_x.reshape(-1)
    v_slab[1, :mlp_dim] = np.asarray(p["b1"], np.float32).reshape(-1)
    v_slab[2, :mlp_dim] = np.asarray(p["g1"], np.float32).reshape(-1)
    v_slab[3, :mlp_dim] = np.asarray(p["be1"], np.float32).reshape(-1)
    v_slab[4, 0] = float(np.asarray(p["b2"]).reshape(()))
    v_slab[4, 1] = float(np.asarray(p["g2"]).reshape(()))
    v_slab[4, 2] = float(np.asarray(p["be2"]).reshape(()))
    return jnp.asarray(w_slab), jnp.asarray(v_slab), h_dim, mlp_dim


@functools.partial(jax.jit, static_argnames=("h_dim", "mlp_dim"))
def trajectory_discriminator_forward(traj, traj_rel, w_slab, v_slab, *, h_dim, mlp_dim):
    """Returns scores of shape (batch, 1) — as the PyTorch module actually produces."""
    del traj  # only used by d_type='global' pooling; d_type='local' ignores it.
    seq_len, batch, _ = traj_rel.shape
    traj_flat = traj_rel.reshape(seq_len * batch, 2)   # time-major flatten (free in XLA)

    kernel = functools.partial(_discriminator_kernel, seq_len=seq_len, batch=batch,
                               h_dim=h_dim, mlp_dim=mlp_dim)
    flops = (2 * seq_len * batch * 4 * h_dim * h_dim        # recurrence matmuls
             + 4 * seq_len * batch * 4 * h_dim              # gates_x VPU MACs
             + 2 * batch * h_dim * mlp_dim                  # classifier layer 1
             + 2 * batch * mlp_dim)                         # classifier layer 2
    transcendentals = 3 * seq_len * batch * 4 * h_dim
    bytes_accessed = 4 * (traj_flat.size + w_slab.size + v_slab.size + batch)

    return pl.pallas_call(
        kernel,
        out_shape=jax.ShapeDtypeStruct((batch, 1), jnp.float32),
        in_specs=[_vmem_spec()] * 3,
        out_specs=_vmem_spec(),
        cost_estimate=pl.CostEstimate(flops=flops,
                                      transcendentals=transcendentals,
                                      bytes_accessed=bytes_accessed),
    )(traj_flat, w_slab, v_slab)


# ----------------------------------------------------------------------------- #
# Pure-JAX reference (original un-refactored math) for a correctness sanity check.
# ----------------------------------------------------------------------------- #
def _reference_forward(traj_rel, p):
    seq_len, batch, _ = traj_rel.shape
    h_dim = p["w_hh"].shape[0]
    h = jnp.zeros((batch, h_dim), jnp.float32)
    c = jnp.zeros((batch, h_dim), jnp.float32)
    for t in range(seq_len):
        emb = traj_rel[t] @ p["w_emb"] + p["b_emb"]
        gates = emb @ p["w_ih"] + p["b_ih"] + h @ p["w_hh"] + p["b_hh"]
        i_g = jax.nn.sigmoid(gates[:, 0 * h_dim:1 * h_dim])
        f_g = jax.nn.sigmoid(gates[:, 1 * h_dim:2 * h_dim])
        g_g = jnp.tanh(gates[:, 2 * h_dim:3 * h_dim])
        o_g = jax.nn.sigmoid(gates[:, 3 * h_dim:4 * h_dim])
        c = f_g * c + i_g * g_g
        h = o_g * jnp.tanh(c)
    eps = 1e-5
    y = h @ p["w1"] + p["b1"]
    y = (y - y.mean(0, keepdims=True)) / jnp.sqrt(y.var(0, keepdims=True) + eps)
    y = jnp.maximum(y * p["g1"] + p["be1"], 0.0)
    z = y @ p["w2"] + p["b2"]
    z = (z - z.mean(0, keepdims=True)) / jnp.sqrt(z.var(0, keepdims=True) + eps)
    return jnp.maximum(z * p["g2"] + p["be2"], 0.0)


def make_params(key, embedding_dim, h_dim, mlp_dim):
    ks = jax.random.split(key, 12)

    def u(k, shape, scale):
        return jax.random.uniform(k, shape, jnp.float32, -scale, scale)

    return {
        # spatial_embedding: Linear(2, embedding_dim)
        "w_emb": u(ks[0], (2, embedding_dim), 1.0 / np.sqrt(2)),
        "b_emb": u(ks[1], (1, embedding_dim), 1.0 / np.sqrt(2)),
        # LSTM(embedding_dim -> h_dim), gate order i,f,g,o; stored as (in, 4*h)
        "w_ih": u(ks[2], (embedding_dim, 4 * h_dim), 1.0 / np.sqrt(h_dim)),
        "b_ih": u(ks[3], (1, 4 * h_dim), 1.0 / np.sqrt(h_dim)),
        "w_hh": u(ks[4], (h_dim, 4 * h_dim), 1.0 / np.sqrt(h_dim)),
        "b_hh": u(ks[5], (1, 4 * h_dim), 1.0 / np.sqrt(h_dim)),
        # classifier: Linear(h_dim, mlp_dim) + BN(mlp_dim)
        "w1": u(ks[6], (h_dim, mlp_dim), 1.0 / np.sqrt(h_dim)),
        "b1": u(ks[7], (1, mlp_dim), 1.0 / np.sqrt(h_dim)),
        "g1": jnp.ones((1, mlp_dim), jnp.float32),
        "be1": jnp.zeros((1, mlp_dim), jnp.float32),
        # Linear(mlp_dim, 1) + BN(1)
        "w2": u(ks[8], (mlp_dim, 1), 1.0 / np.sqrt(mlp_dim)),
        "b2": u(ks[9], (1, 1), 1.0 / np.sqrt(mlp_dim)),
        "g2": jnp.ones((1, 1), jnp.float32),
        "be2": jnp.zeros((1, 1), jnp.float32),
    }


if __name__ == "__main__":
    obs_len, pred_len = 4, 4
    seq_len = obs_len + pred_len          # 8
    batch = 8
    embedding_dim = 32
    h_dim = 32
    mlp_dim = 128

    key = jax.random.PRNGKey(0)
    k_traj, k_rel, k_par = jax.random.split(key, 3)
    traj = jax.random.normal(k_traj, (seq_len, batch, 2), jnp.float32)
    traj_rel = jax.random.normal(k_rel, (seq_len, batch, 2), jnp.float32)
    params = make_params(k_par, embedding_dim, h_dim, mlp_dim)

    # One-time offline packing / folding (not part of the per-call path).
    w_slab, v_slab, h_dim_s, mlp_dim_s = pack_params(params)

    scores = trajectory_discriminator_forward(traj, traj_rel, w_slab, v_slab,
                                              h_dim=h_dim_s, mlp_dim=mlp_dim_s)
    scores = jax.block_until_ready(scores)

    ref = _reference_forward(traj_rel, params)
    assert scores.shape == (batch, 1)
    np.testing.assert_allclose(np.asarray(scores), np.asarray(ref), rtol=1e-4, atol=1e-4)

    print("KERNEL_OK")
</pallas_src>

<mosaic_0001>
module attributes {stable_mosaic.version = 11 : i64} {
  func.func @_discriminator_kernel(%arg0: memref<64x2xf32, #tpu.memory_space<vmem>>, %arg1: memref<80x128xf32, #tpu.memory_space<vmem>>, %arg2: memref<5x128xf32, #tpu.memory_space<vmem>>, %arg3: memref<8x1xf32, #tpu.memory_space<vmem>>) attributes {dimension_semantics = [], scalar_prefetch = 0 : i64, scratch_operands = 0 : i64, tpu.core_type = #tpu.core_type<tc>} {
    %c0 = arith.constant 0 : index
    %c0_0 = arith.constant 0 : index
    %0 = vector.load %arg1[%c0, %c0_0] : memref<80x128xf32, #tpu.memory_space<vmem>>, vector<2x128xf32>
    %c8 = arith.constant 8 : index
    %c0_1 = arith.constant 0 : index
    %1 = vector.load %arg1[%c8, %c0_1] : memref<80x128xf32, #tpu.memory_space<vmem>>, vector<32x128xf32>
    %c40 = arith.constant 40 : index
    %c0_2 = arith.constant 0 : index
    %2 = vector.load %arg1[%c40, %c0_2] : memref<80x128xf32, #tpu.memory_space<vmem>>, vector<32x128xf32>
    %c72 = arith.constant 72 : index
    %c0_3 = arith.constant 0 : index
    %3 = vector.load %arg1[%c72, %c0_3] : memref<80x128xf32, #tpu.memory_space<vmem>>, vector<1x128xf32>
    %c0_4 = arith.constant 0 : index
    %c0_5 = arith.constant 0 : index
    %4 = vector.load %arg2[%c0_4, %c0_5] : memref<5x128xf32, #tpu.memory_space<vmem>>, vector<1x128xf32>
    %c1 = arith.constant 1 : index
    %c0_6 = arith.constant 0 : index
    %5 = vector.load %arg2[%c1, %c0_6] : memref<5x128xf32, #tpu.memory_space<vmem>>, vector<1x128xf32>
    %c2 = arith.constant 2 : index
    %c0_7 = arith.constant 0 : index
    %6 = vector.load %arg2[%c2, %c0_7] : memref<5x128xf32, #tpu.memory_space<vmem>>, vector<1x128xf32>
    %c3 = arith.constant 3 : index
    %c0_8 = arith.constant 0 : index
    %7 = vector.load %arg2[%c3, %c0_8] : memref<5x128xf32, #tpu.memory_space<vmem>>, vector<1x128xf32>
    %c4 = arith.constant 4 : index
    %c0_9 = arith.constant 0 : index
    %8 = vector.load %arg2[%c4, %c0_9] : memref<5x128xf32, #tpu.memory_space<vmem>>, vector<1x1xf32>
    %c4_10 = arith.constant 4 : index
    %c1_11 = arith.constant 1 : index
    %9 = vector.load %arg2[%c4_10, %c1_11] : memref<5x128xf32, #tpu.memory_space<vmem>>, vector<1x1xf32>
    %c4_12 = arith.constant 4 : index
    %c2_13 = arith.constant 2 : index
    %10 = vector.load %arg2[%c4_12, %c2_13] : memref<5x128xf32, #tpu.memory_space<vmem>>, vector<1x1xf32>
    %c0_14 = arith.constant 0 : index
    %c0_15 = arith.constant 0 : index
    %11 = vector.load %arg0[%c0_14, %c0_15] : memref<64x2xf32, #tpu.memory_space<vmem>>, vector<64x2xf32>
    %12 = vector.extract_strided_slice %11 {offsets = [0, 0], sizes = [64, 1], strides = [1, 1]} : vector<64x2xf32> to vector<64x1xf32>
    %13 = vector.extract_strided_slice %0 {offsets = [0, 0], sizes = [1, 128], strides = [1, 1]} : vector<2x128xf32> to vector<1x128xf32>
    %14 = vector.broadcast %12 : vector<64x1xf32> to vector<64x128xf32>
    %15 = vector.broadcast %13 : vector<1x128xf32> to vector<64x128xf32>
    %16 = arith.mulf %14, %15 : vector<64x128xf32>
    %17 = vector.extract_strided_slice %11 {offsets = [0, 1], sizes = [64, 1], strides = [1, 1]} : vector<64x2xf32> to vector<64x1xf32>
    %18 = vector.extract_strided_slice %0 {offsets = [1, 0], sizes = [1, 128], strides = [1, 1]} : vector<2x128xf32> to vector<1x128xf32>
    %19 = vector.broadcast %17 : vector<64x1xf32> to vector<64x128xf32>
    %20 = vector.broadcast %18 : vector<1x128xf32> to vector<64x128xf32>
    %21 = arith.mulf %19, %20 : vector<64x128xf32>
    %22 = arith.addf %16, %21 : vector<64x128xf32>
    %23 = vector.broadcast %4 : vector<1x128xf32> to vector<64x128xf32>
    %24 = arith.addf %22, %23 : vector<64x128xf32>
    %cst = arith.constant 0.000000e+00 : f32
    %25 = vector.broadcast %cst : f32 to vector<8x32xf32>
    %cst_16 = arith.constant 0.000000e+00 : f32
    %26 = vector.broadcast %cst_16 : f32 to vector<8x32xf32>
    %27 = vector.extract_strided_slice %24 {offsets = [0, 0], sizes = [8, 128], strides = [1, 1]} : vector<64x128xf32> to vector<8x128xf32>
    %cst_17 = arith.constant dense<0.000000e+00> : vector<8x128xf32>
    %28 = tpu.matmul %25, %1, %cst_17 {dimension_numbers = #tpu.dot_dimension_numbers<[1], [0], [0], [1], [0, 0, 1, 1], [], []>} : vector<8x32xf32>, vector<32x128xf32>, vector<8x128xf32> -> vector<8x128xf32>
    %29 = arith.addf %27, %28 : vector<8x128xf32>
    %30 = arith.negf %29 : vector<8x128xf32>
    %31 = math.exp %30 : vector<8x128xf32>
    %cst_18 = arith.constant 1.000000e+00 : f32
    %32 = vector.broadcast %cst_18 : f32 to vector<8x128xf32>
    %33 = arith.addf %32, %31 : vector<8x128xf32>
    %34 = arith.divf %32, %33 : vector<8x128xf32>
    %35 = math.tanh %29 : vector<8x128xf32>
    %36 = vector.extract_strided_slice %34 {offsets = [0, 0], sizes = [8, 32], strides = [1, 1]} : vector<8x128xf32> to vector<8x32xf32>
    %37 = vector.extract_strided_slice %34 {offsets = [0, 32], sizes = [8, 32], strides = [1, 1]} : vector<8x128xf32> to vector<8x32xf32>
    %38 = vector.extract_strided_slice %35 {offsets = [0, 64], sizes = [8, 32], strides = [1, 1]} : vector<8x128xf32> to vector<8x32xf32>
    %39 = vector.extract_strided_slice %34 {offsets = [0, 96], sizes = [8, 32], strides = [1, 1]} : vector<8x128xf32> to vector<8x32xf32>
    %40 = arith.mulf %37, %26 : vector<8x32xf32>
    %41 = arith.mulf %36, %38 : vector<8x32xf32>
    %42 = arith.addf %40, %41 : vector<8x32xf32>
    %43 = math.tanh %42 : vector<8x32xf32>
    %44 = arith.mulf %39, %43 : vector<8x32xf32>
    %45 = vector.extract_strided_slice %24 {offsets = [8, 0], sizes = [8, 128], strides = [1, 1]} : vector<64x128xf32> to vector<8x128xf32>
    %cst_19 = arith.constant dense<0.000000e+00> : vector<8x128xf32>
    %46 = tpu.matmul %44, %1, %cst_19 {dimension_numbers = #tpu.dot_dimension_numbers<[1], [0], [0], [1], [0, 0, 1, 1], [], []>} : vector<8x32xf32>, vector<32x128xf32>, vector<8x128xf32> -> vector<8x128xf32>
    %47 = arith.addf %45, %46 : vector<8x128xf32>
    %48 = arith.negf %47 : vector<8x128xf32>
    %49 = math.exp %48 : vector<8x128xf32>
    %cst_20 = arith.constant 1.000000e+00 : f32
    %50 = vector.broadcast %cst_20 : f32 to vector<8x128xf32>
    %51 = arith.addf %50, %49 : vector<8x128xf32>
    %52 = arith.divf %50, %51 : vector<8x128xf32>
    %53 = math.tanh %47 : vector<8x128xf32>
    %54 = vector.extract_strided_slice %52 {offsets = [0, 0], sizes = [8, 32], strides = [1, 1]} : vector<8x128xf32> to vector<8x32xf32>
    %55 = vector.extract_strided_slice %52 {offsets = [0, 32], sizes = [8, 32], strides = [1, 1]} : vector<8x128xf32> to vector<8x32xf32>
    %56 = vector.extract_strided_slice %53 {offsets = [0, 64], sizes = [8, 32], strides = [1, 1]} : vector<8x128xf32> to vector<8x32xf32>
    %57 = vector.extract_strided_slice %52 {offsets = [0, 96], sizes = [8, 32], strides = [1, 1]} : vector<8x128xf32> to vector<8x32xf32>
    %58 = arith.mulf %55, %42 : vector<8x32xf32>
    %59 = arith.mulf %54, %56 : vector<8x32xf32>
    %60 = arith.addf %58, %59 : vector<8x32xf32>
    %61 = math.tanh %60 : vector<8x32xf32>
    %62 = arith.mulf %57, %61 : vector<8x32xf32>
    %63 = vector.extract_strided_slice %24 {offsets = [16, 0], sizes = [8, 128], strides = [1, 1]} : vector<64x128xf32> to vector<8x128xf32>
    %cst_21 = arith.constant dense<0.000000e+00> : vector<8x128xf32>
    %64 = tpu.matmul %62, %1, %cst_21 {dimension_numbers = #tpu.dot_dimension_numbers<[1], [0], [0], [1], [0, 0, 1, 1], [], []>} : vector<8x32xf32>, vector<32x128xf32>, vector<8x128xf32> -> vector<8x128xf32>
    %65 = arith.addf %63, %64 : vector<8x128xf32>
    %66 = arith.negf %65 : vector<8x128xf32>
    %67 = math.exp %66 : vector<8x128xf32>
    %cst_22 = arith.constant 1.000000e+00 : f32
    %68 = vector.broadcast %cst_22 : f32 to vector<8x128xf32>
    %69 = arith.addf %68, %67 : vector<8x128xf32>
    %70 = arith.divf %68, %69 : vector<8x128xf32>
    %71 = math.tanh %65 : vector<8x128xf32>
    %72 = vector.extract_strided_slice %70 {offsets = [0, 0], sizes = [8, 32], strides = [1, 1]} : vector<8x128xf32> to vector<8x32xf32>
    %73 = vector.extract_strided_slice %70 {offsets = [0, 32], sizes = [8, 32], strides = [1, 1]} : vector<8x128xf32> to vector<8x32xf32>
    %74 = vector.extract_strided_slice %71 {offsets = [0, 64], sizes = [8, 32], strides = [1, 1]} : vector<8x128xf32> to vector<8x32xf32>
    %75 = vector.extract_strided_slice %70 {offsets = [0, 96], sizes = [8, 32], strides = [1, 1]} : vector<8x128xf32> to vector<8x32xf32>
    %76 = arith.mulf %73, %60 : vector<8x32xf32>
    %77 = arith.mulf %72, %74 : vector<8x32xf32>
    %78 = arith.addf %76, %77 : vector<8x32xf32>
    %79 = math.tanh %78 : vector<8x32xf32>
    %80 = arith.mulf %75, %79 : vector<8x32xf32>
    %81 = vector.extract_strided_slice %24 {offsets = [24, 0], sizes = [8, 128], strides = [1, 1]} : vector<64x128xf32> to vector<8x128xf32>
    %cst_23 = arith.constant dense<0.000000e+00> : vector<8x128xf32>
    %82 = tpu.matmul %80, %1, %cst_23 {dimension_numbers = #tpu.dot_dimension_numbers<[1], [0], [0], [1], [0, 0, 1, 1], [], []>} : vector<8x32xf32>, vector<32x128xf32>, vector<8x128xf32> -> vector<8x128xf32>
    %83 = arith.addf %81, %82 : vector<8x128xf32>
    %84 = arith.negf %83 : vector<8x128xf32>
    %85 = math.exp %84 : vector<8x128xf32>
    %cst_24 = arith.constant 1.000000e+00 : f32
    %86 = vector.broadcast %cst_24 : f32 to vector<8x128xf32>
    %87 = arith.addf %86, %85 : vector<8x128xf32>
    %88 = arith.divf %86, %87 : vector<8x128xf32>
    %89 = math.tanh %83 : vector<8x128xf32>
    %90 = vector.extract_strided_slice %88 {offsets = [0, 0], sizes = [8, 32], strides = [1, 1]} : vector<8x128xf32> to vector<8x32xf32>
    %91 = vector.extract_strided_slice %88 {offsets = [0, 32], sizes = [8, 32], strides = [1, 1]} : vector<8x128xf32> to vector<8x32xf32>
    %92 = vector.extract_strided_slice %89 {offsets = [0, 64], sizes = [8, 32], strides = [1, 1]} : vector<8x128xf32> to vector<8x32xf32>
    %93 = vector.extract_strided_slice %88 {offsets = [0, 96], sizes = [8, 32], strides = [1, 1]} : vector<8x128xf32> to vector<8x32xf32>
    %94 = arith.mulf %91, %78 : vector<8x32xf32>
    %95 = arith.mulf %90, %92 : vector<8x32xf32>
    %96 = arith.addf %94, %95 : vector<8x32xf32>
    %97 = math.tanh %96 : vector<8x32xf32>
    %98 = arith.mulf %93, %97 : vector<8x32xf32>
    %99 = vector.extract_strided_slice %24 {offsets = [32, 0], sizes = [8, 128], strides = [1, 1]} : vector<64x128xf32> to vector<8x128xf32>
    %cst_25 = arith.constant dense<0.000000e+00> : vector<8x128xf32>
    %100 = tpu.matmul %98, %1, %cst_25 {dimension_numbers = #tpu.dot_dimension_numbers<[1], [0], [0], [1], [0, 0, 1, 1], [], []>} : vector<8x32xf32>, vector<32x128xf32>, vector<8x128xf32> -> vector<8x128xf32>
    %101 = arith.addf %99, %100 : vector<8x128xf32>
    %102 = arith.negf %101 : vector<8x128xf32>
    %103 = math.exp %102 : vector<8x128xf32>
    %cst_26 = arith.constant 1.000000e+00 : f32
    %104 = vector.broadcast %cst_26 : f32 to vector<8x128xf32>
    %105 = arith.addf %104, %103 : vector<8x128xf32>
    %106 = arith.divf %104, %105 : vector<8x128xf32>
    %107 = math.tanh %101 : vector<8x128xf32>
    %108 = vector.extract_strided_slice %106 {offsets = [0, 0], sizes = [8, 32], strides = [1, 1]} : vector<8x128xf32> to vector<8x32xf32>
    %109 = vector.extract_strided_slice %106 {offsets = [0, 32], sizes = [8, 32], strides = [1, 1]} : vector<8x128xf32> to vector<8x32xf32>
    %110 = vector.extract_strided_slice %107 {offsets = [0, 64], sizes = [8, 32], strides = [1, 1]} : vector<8x128xf32> to vector<8x32xf32>
    %111 = vector.extract_strided_slice %106 {offsets = [0, 96], sizes = [8, 32], strides = [1, 1]} : vector<8x128xf32> to vector<8x32xf32>
    %112 = arith.mulf %109, %96 : vector<8x32xf32>
    %113 = arith.mulf %108, %110 : vector<8x32xf32>
    %114 = arith.addf %112, %113 : vector<8x32xf32>
    %115 = math.tanh %114 : vector<8x32xf32>
    %116 = arith.mulf %111, %115 : vector<8x32xf32>
    %117 = vector.extract_strided_slice %24 {offsets = [40, 0], sizes = [8, 128], strides = [1, 1]} : vector<64x128xf32> to vector<8x128xf32>
    %cst_27 = arith.constant dense<0.000000e+00> : vector<8x128xf32>
    %118 = tpu.matmul %116, %1, %cst_27 {dimension_numbers = #tpu.dot_dimension_numbers<[1], [0], [0], [1], [0, 0, 1, 1], [], []>} : vector<8x32xf32>, vector<32x128xf32>, vector<8x128xf32> -> vector<8x128xf32>
    %119 = arith.addf %117, %118 : vector<8x128xf32>
    %120 = arith.negf %119 : vector<8x128xf32>
    %121 = math.exp %120 : vector<8x128xf32>
    %cst_28 = arith.constant 1.000000e+00 : f32
    %122 = vector.broadcast %cst_28 : f32 to vector<8x128xf32>
    %123 = arith.addf %122, %121 : vector<8x128xf32>
    %124 = arith.divf %122, %123 : vector<8x128xf32>
    %125 = math.tanh %119 : vector<8x128xf32>
    %126 = vector.extract_strided_slice %124 {offsets = [0, 0], sizes = [8, 32], strides = [1, 1]} : vector<8x128xf32> to vector<8x32xf32>
    %127 = vector.extract_strided_slice %124 {offsets = [0, 32], sizes = [8, 32], strides = [1, 1]} : vector<8x128xf32> to vector<8x32xf32>
    %128 = vector.extract_strided_slice %125 {offsets = [0, 64], sizes = [8, 32], strides = [1, 1]} : vector<8x128xf32> to vector<8x32xf32>
    %129 = vector.extract_strided_slice %124 {offsets = [0, 96], sizes = [8, 32], strides = [1, 1]} : vector<8x128xf32> to vector<8x32xf32>
    %130 = arith.mulf %127, %114 : vector<8x32xf32>
    %131 = arith.mulf %126, %128 : vector<8x32xf32>
    %132 = arith.addf %130, %131 : vector<8x32xf32>
    %133 = math.tanh %132 : vector<8x32xf32>
    %134 = arith.mulf %129, %133 : vector<8x32xf32>
    %135 = vector.extract_strided_slice %24 {offsets = [48, 0], sizes = [8, 128], strides = [1, 1]} : vector<64x128xf32> to vector<8x128xf32>
    %cst_29 = arith.constant dense<0.000000e+00> : vector<8x128xf32>
    %136 = tpu.matmul %134, %1, %cst_29 {dimension_numbers = #tpu.dot_dimension_numbers<[1], [0], [0], [1], [0, 0, 1, 1], [], []>} : vector<8x32xf32>, vector<32x128xf32>, vector<8x128xf32> -> vector<8x128xf32>
    %137 = arith.addf %135, %136 : vector<8x128xf32>
    %138 = arith.negf %137 : vector<8x128xf32>
    %139 = math.exp %138 : vector<8x128xf32>
    %cst_30 = arith.constant 1.000000e+00 : f32
    %140 = vector.broadcast %cst_30 : f32 to vector<8x128xf32>
    %141 = arith.addf %140, %139 : vector<8x128xf32>
    %142 = arith.divf %140, %141 : vector<8x128xf32>
    %143 = math.tanh %137 : vector<8x128xf32>
    %144 = vector.extract_strided_slice %142 {offsets = [0, 0], sizes = [8, 32], strides = [1, 1]} : vector<8x128xf32> to vector<8x32xf32>
    %145 = vector.extract_strided_slice %142 {offsets = [0, 32], sizes = [8, 32], strides = [1, 1]} : vector<8x128xf32> to vector<8x32xf32>
    %146 = vector.extract_strided_slice %143 {offsets = [0, 64], sizes = [8, 32], strides = [1, 1]} : vector<8x128xf32> to vector<8x32xf32>
    %147 = vector.extract_strided_slice %142 {offsets = [0, 96], sizes = [8, 32], strides = [1, 1]} : vector<8x128xf32> to vector<8x32xf32>
    %148 = arith.mulf %145, %132 : vector<8x32xf32>
    %149 = arith.mulf %144, %146 : vector<8x32xf32>
    %150 = arith.addf %148, %149 : vector<8x32xf32>
    %151 = math.tanh %150 : vector<8x32xf32>
    %152 = arith.mulf %147, %151 : vector<8x32xf32>
    %153 = vector.extract_strided_slice %24 {offsets = [56, 0], sizes = [8, 128], strides = [1, 1]} : vector<64x128xf32> to vector<8x128xf32>
    %cst_31 = arith.constant dense<0.000000e+00> : vector<8x128xf32>
    %154 = tpu.matmul %152, %1, %cst_31 {dimension_numbers = #tpu.dot_dimension_numbers<[1], [0], [0], [1], [0, 0, 1, 1], [], []>} : vector<8x32xf32>, vector<32x128xf32>, vector<8x128xf32> -> vector<8x128xf32>
    %155 = arith.addf %153, %154 : vector<8x128xf32>
    %156 = arith.negf %155 : vector<8x128xf32>
    %157 = math.exp %156 : vector<8x128xf32>
    %cst_32 = arith.constant 1.000000e+00 : f32
    %158 = vector.broadcast %cst_32 : f32 to vector<8x128xf32>
    %159 = arith.addf %158, %157 : vector<8x128xf32>
    %160 = arith.divf %158, %159 : vector<8x128xf32>
    %161 = math.tanh %155 : vector<8x128xf32>
    %162 = vector.extract_strided_slice %160 {offsets = [0, 0], sizes = [8, 32], strides = [1, 1]} : vector<8x128xf32> to vector<8x32xf32>
    %163 = vector.extract_strided_slice %160 {offsets = [0, 32], sizes = [8, 32], strides = [1, 1]} : vector<8x128xf32> to vector<8x32xf32>
    %164 = vector.extract_strided_slice %161 {offsets = [0, 64], sizes = [8, 32], strides = [1, 1]} : vector<8x128xf32> to vector<8x32xf32>
    %165 = vector.extract_strided_slice %160 {offsets = [0, 96], sizes = [8, 32], strides = [1, 1]} : vector<8x128xf32> to vector<8x32xf32>
    %166 = arith.mulf %163, %150 : vector<8x32xf32>
    %167 = arith.mulf %162, %164 : vector<8x32xf32>
    %168 = arith.addf %166, %167 : vector<8x32xf32>
    %169 = math.tanh %168 : vector<8x32xf32>
    %170 = arith.mulf %165, %169 : vector<8x32xf32>
    %cst_33 = arith.constant dense<0.000000e+00> : vector<8x128xf32>
    %171 = tpu.matmul %170, %2, %cst_33 {dimension_numbers = #tpu.dot_dimension_numbers<[1], [0], [0], [1], [0, 0, 1, 1], [], []>} : vector<8x32xf32>, vector<32x128xf32>, vector<8x128xf32> -> vector<8x128xf32>
    %172 = vector.broadcast %5 : vector<1x128xf32> to vector<8x128xf32>
    %173 = arith.addf %171, %172 : vector<8x128xf32>
    %cst_34 = arith.constant dense<0.000000e+00> : vector<128xf32>
    %174 = vector.multi_reduction <add>, %173, %cst_34 [0] : vector<8x128xf32> to vector<128xf32>
    %175 = vector.shape_cast %174 : vector<128xf32> to vector<1x128xf32>
    %cst_35 = arith.constant 8.000000e+00 : f32
    %176 = vector.broadcast %cst_35 : f32 to vector<1x128xf32>
    %177 = arith.divf %175, %176 : vector<1x128xf32>
    %178 = vector.broadcast %177 : vector<1x128xf32> to vector<8x128xf32>
    %179 = arith.subf %173, %178 : vector<8x128xf32>
    %180 = arith.mulf %179, %179 : vector<8x128xf32>
    %cst_36 = arith.constant dense<0.000000e+00> : vector<128xf32>
    %181 = vector.multi_reduction <add>, %180, %cst_36 [0] : vector<8x128xf32> to vector<128xf32>
    %182 = vector.shape_cast %181 : vector<128xf32> to vector<1x128xf32>
    %cst_37 = arith.constant 8.000000e+00 : f32
    %183 = vector.broadcast %cst_37 : f32 to vector<1x128xf32>
    %184 = arith.divf %182, %183 : vector<1x128xf32>
    %185 = vector.broadcast %177 : vector<1x128xf32> to vector<8x128xf32>
    %186 = arith.subf %173, %185 : vector<8x128xf32>
    %cst_38 = arith.constant 9.99999974E-6 : f32
    %187 = vector.broadcast %cst_38 : f32 to vector<1x128xf32>
    %188 = arith.addf %184, %187 : vector<1x128xf32>
    %189 = math.rsqrt %188 : vector<1x128xf32>
    %190 = vector.broadcast %189 : vector<1x128xf32> to vector<8x128xf32>
    %191 = arith.mulf %186, %190 : vector<8x128xf32>
    %192 = vector.broadcast %6 : vector<1x128xf32> to vector<8x128xf32>
    %193 = arith.mulf %191, %192 : vector<8x128xf32>
    %194 = vector.broadcast %7 : vector<1x128xf32> to vector<8x128xf32>
    %195 = arith.addf %193, %194 : vector<8x128xf32>
    %cst_39 = arith.constant 0.000000e+00 : f32
    %196 = vector.broadcast %cst_39 : f32 to vector<8x128xf32>
    %197 = arith.maximumf %195, %196 : vector<8x128xf32>
    %198 = vector.broadcast %3 : vector<1x128xf32> to vector<8x128xf32>
    %199 = arith.mulf %197, %198 : vector<8x128xf32>
    %cst_40 = arith.constant dense<0.000000e+00> : vector<8xf32>
    %200 = vector.multi_reduction <add>, %199, %cst_40 [1] : vector<8x128xf32> to vector<8xf32>
    %201 = vector.shape_cast %200 : vector<8xf32> to vector<8x1xf32>
    %202 = vector.broadcast %8 : vector<1x1xf32> to vector<8x1xf32>
    %203 = arith.addf %201, %202 : vector<8x1xf32>
    %cst_41 = arith.constant dense<0.000000e+00> : vector<1xf32>
    %204 = vector.multi_reduction <add>, %203, %cst_41 [0] : vector<8x1xf32> to vector<1xf32>
    %205 = vector.shape_cast %204 : vector<1xf32> to vector<1x1xf32>
    %cst_42 = arith.constant 8.000000e+00 : f32
    %206 = vector.broadcast %cst_42 : f32 to vector<1x1xf32>
    %207 = arith.divf %205, %206 : vector<1x1xf32>
    %208 = vector.broadcast %207 : vector<1x1xf32> to vector<8x1xf32>
    %209 = arith.subf %203, %208 : vector<8x1xf32>
    %210 = arith.mulf %209, %209 : vector<8x1xf32>
    %cst_43 = arith.constant dense<0.000000e+00> : vector<1xf32>
    %211 = vector.multi_reduction <add>, %210, %cst_43 [0] : vector<8x1xf32> to vector<1xf32>
    %212 = vector.shape_cast %211 : vector<1xf32> to vector<1x1xf32>
    %cst_44 = arith.constant 8.000000e+00 : f32
    %213 = vector.broadcast %cst_44 : f32 to vector<1x1xf32>
    %214 = arith.divf %212, %213 : vector<1x1xf32>
    %215 = vector.broadcast %207 : vector<1x1xf32> to vector<8x1xf32>
    %216 = arith.subf %203, %215 : vector<8x1xf32>
    %cst_45 = arith.constant 9.99999974E-6 : f32
    %217 = vector.broadcast %cst_45 : f32 to vector<1x1xf32>
    %218 = arith.addf %214, %217 : vector<1x1xf32>
    %219 = math.rsqrt %218 : vector<1x1xf32>
    %220 = vector.broadcast %219 : vector<1x1xf32> to vector<8x1xf32>
    %221 = arith.mulf %216, %220 : vector<8x1xf32>
    %222 = vector.broadcast %9 : vector<1x1xf32> to vector<8x1xf32>
    %223 = arith.mulf %221, %222 : vector<8x1xf32>
    %224 = vector.broadcast %10 : vector<1x1xf32> to vector<8x1xf32>
    %225 = arith.addf %223, %224 : vector<8x1xf32>
    %cst_46 = arith.constant 0.000000e+00 : f32
    %226 = vector.broadcast %cst_46 : f32 to vector<8x1xf32>
    %227 = arith.maximumf %225, %226 : vector<8x1xf32>
    %c0_47 = arith.constant 0 : index
    %c0_48 = arith.constant 0 : index
    %228 = vector.load %arg3[%c0_47, %c0_48] : memref<8x1xf32, #tpu.memory_space<vmem>>, vector<8x1xf32>
    tpu.vector_store %arg3[%c0_47, %c0_48], %227 {strides = array<i32>} : memref<8x1xf32, #tpu.memory_space<vmem>>, vector<8x1xf32>,
    return
  }
}

</mosaic_0001>

<bundles_post_ra>
// kernel: trajectory_discriminator_forward.1
= control target key start
LH: loop header
LB: loop body
LE: loop exit
PB: predicated region body
PF: predicated region fallthrough
CT: control target
= control target key end

     0   :  { %v1411_v0 = vmov 0.0|0.0   ;;  %vm1412_vm0 = vmmov 0   ;;  %v1413_v4 = vmov 0.0   ;;  %v1414_v7 = vmov 0   ;;  %s1416_s26 = smov 64   ;;  %s1417_s27 = smov 32   ;;  %s1642_s1 = inlined_call_operand.vmem [shape: f32[80,128], index: 1, kind: input, shape index: {}]   ;;  %s1643_s0 = inlined_call_operand.vmem [shape: f32[64,2], index: 0, kind: input, shape index: {}]   ;;  %s1644_s2 = inlined_call_operand.vmem [shape: f32[5,128], index: 2, kind: input, shape index: {}]   ;;  %s1645_s3 = inlined_call_operand.vmem [shape: f32[8,1], index: 3, kind: output, shape index: {}]  }
   0x1   :  { %1277 = vmatprep.subr.bf16.mxu0 %v1411_v0  ;;  %v15_v1 = vld [vmem:[%s1642_s1 + $0x8] sm:$0xff]  ;;  %v16_v2 = vld [vmem:[%s1642_s1 + $0x10] sm:$0xff]  ;;  %v17_v3 = vld [vmem:[%s1642_s1 + $0x18] sm:$0xff]  ;;  %1186 = vmatprep.mubr.msk.f32.mxu0 %vm1412_vm0, %v1413_v4  ;;  %v1415_v10 = vmov 1   ;;  %v77_v11 = vlaneseq  ;;  %vm153_vm1 = vcmask 261120   ;;  %s1418_s24 = smov 127  }
   0x2   :  { %v1452_v5 = vpack.c.bf16 %v16_v2, %v15_v1  ;;  %v18_v6 = vld [vmem:[%s1642_s1 + $0x20] sm:$0xff]  ;;  %1340 = vset.pattern.permute.xlu0 %v1414_v7  ;;  %1342 = vset.pattern.permute.xlu1 %v1414_v7  ;;  %v30_v39 = vld [vmem:[%s1643_s0 + $0x8] sm:$0xff]  ;;  %v31_v63 = vld [vmem:[%s1643_s0 + $0x10] sm:$0xff]  ;;  %s1419_s25 = smov 126   ;;  %vm1074_vm2 = vcmask 7168  }
   0x3   :  { %v29_v8 = vld [vmem:[%s1643_s0] sm:$0xff]  ;;  %1283 = vmatprep.subr.bf16.mxu1 %v1411_v0  ;;  %v1462_v9 = vpack.c.bf16 %v18_v6, %v17_v3  ;;  %1197 = vmatprep.mubr.msk.f32.mxu1 %vm1412_vm0, %v1413_v4  ;;  %v78_v12 = vshrl.u32 %v77_v11, 7 }
   0x4   :  { %39 = vperm.xlu0 %1340, %v29_v8   ;;  %1279 = vmatpush3.bf16.msra.mxu0 %v1452_v5  ;;  %v14_v16 = vld [vmem:[%s1642_s1] sm:$0x3] }
   0x5   :  { %1285 = vmatpush3.bf16.msra.mxu1 %v1452_v5  ;;  %1280 = vmatprep.subr.bf16.mxu0 %v1411_v0  ;;  %v79_v14 = vsub.s32 0, %v78_v12  ;;  %v123_v15 = vsub.s32 1, %v78_v12  ;;  %v1492_v23 = vld [vmem:[%s1644_s2] ss:$0 sm:$0xff] }
   0x6   :  { %1286 = vmatprep.subr.bf16.mxu1 %v1411_v0 }
   0x7   :  { %v1483_v17 = vrot.slane %v14_v16, %v79_v14  ;;  %v1485_v18 = vrot.slane %v14_v16, %v123_v15 }
   0x8   :  { %1341 = vset.pattern.permute.xlu0 %v1415_v10  ;;  %1282 = vmatpush3.bf16.msra.mxu0 %v1462_v9 }
   0x9   :  { %90 = vperm.xlu0 %1341, %v29_v8   ;;  %1288 = vmatpush3.bf16.msra.mxu1 %v1462_v9 }
   0xa   :  { %1289 = vmatprep.subr.bf16.mxu0 %v1411_v0  ;;  %1295 = vmatprep.subr.bf16.mxu1 %v1411_v0 }
   0xb   :  { %1187 = vmatmul.mubr.f32.vlgmr.msra.gmra.mrb[0].mxu0 %v1413_v4 }
   0xc   :  { %1291 = vmatpush3.bf16.msra.mxu0 %v1452_v5  ;;  %1208 = vmatprep.mubr.msk.f32.mxu0 %vm1412_vm0, %v1413_v4 }
   0xd   :  { %1292 = vmatprep.subr.bf16.mxu0 %v1411_v0 }
  0x10   :  { %1294 = vmatpush3.bf16.msra.mxu0 %v1462_v9 }
  0x11   :  { %1301 = vmatprep.subr.bf16.mxu0 %v1411_v0 }
  0x83   :  { %v40_v13 = vpop.permute.xlu0 %39 }
  0x84   :  { %v81_v20 = vmul.f32 %v1483_v17, %v40_v13 }
  0x88   :  { %v91_v19 = vpop.permute.xlu0 %90 }
  0x89   :  { %v125_v21 = vmul.f32 %v1485_v18, %v91_v19 }
  0x8b   :  { %v133_v22 = vadd.f32 %v125_v21, %v81_v20 }
  0x8d   :  { %v145_v24 = vadd.f32 %v1492_v23, %v133_v22 }
  0xde   :  { %v223_v25 = vpop.f32.mrb[0].mxu0 }
  0xdf   :  { %v227_v26 = vadd.f32 %v223_v25, %v145_v24  ;;  %v1188_v27 = vpop.f32.mrb[1].mxu0 }
  0xe1   :  { %1343 = vtanh.f32 %v227_v26  ;;  %v1112_v29 = vmul.f32 -1.442695, %v227_v26 }
  0xe3   :  { %1345 = vpow2.f32 %v1112_v29 }
  0xeb   :  { %v1344_v28 = vpop.eup %1343 }
  0xec   :  { %237 = vrot.lane.b32.xlu1 %v1344_v28, %s1416_s26 }
  0xed   :  { %v1346_v30 = vpop.eup %1345 }
  0xee   :  { %v231_v31 = vadd.f32 1.0, %v1346_v30  ;;  %v32_v30 = vld [vmem:[%s1643_s0 + $0x18] sm:$0xff] }
  0xf0   :  { %1347 = vrcp.f32 %v231_v31 }
  0xfa   :  { %v1348_v32 = vpop.eup %1347 }
  0xfb   :  { %v235_v35 = vmul.f32 0.0, %v1348_v32 }
 0x15e   :  { %v238_v33 = vpop.permute.xlu1 %237 }
 0x15f   :  { %v240_v34 = vmul.f32 %v1348_v32, %v238_v33 }
 0x161   :  { %242 = vrot.lane.b32.xlu1 %v240_v34, %s1417_s27 }
 0x1d3   :  { %v243_v36 = vpop.permute.xlu1 %242 }
 0x1d4   :  { %v245_v37 = vadd.f32 %v243_v36, %v235_v35 }
 0x1d6   :  { %1349 = vtanh.f32 %v245_v37 }
 0x1e0   :  { %v1350_v38 = vpop.eup %1349 }
 0x1e1   :  { %248 = vrot.lane.b32.xlu1 %v1350_v38, %s1416_s26 }
 0x1e5   :  { %44 = vperm.xlu1 %1342, %v30_v39  }
 0x253   :  { %v249_v40 = vpop.permute.xlu1 %248 }
 0x254   :  { %v251_v41 = vmul.f32 %v1348_v32, %v249_v40 }
 0x256   :  { %253 = vrot.lane.b32.xlu0 %v251_v41, %s1417_s27 }
 0x25a   :  { %94 = vperm.xlu0 %1341, %v30_v39  }
 0x264   :  { %v45_v44 = vpop.permute.xlu1 %44 }
 0x265   :  { %v82_v46 = vmul.f32 %v1483_v17, %v45_v44 }
 0x2c8   :  { %v254_v42 = vpop.permute.xlu0 %253 }
 0x2c9   :  { %1198 = vmatmul.mubr.msk.f32.vlgmr.msra.gmra.mrb[0].mxu1 %vm153_vm1, %v254_v42 }
 0x2ca   :  { %1297 = vmatpush3.bf16.msra.mxu1 %v1452_v5  ;;  %1219 = vmatprep.mubr.msk.f32.mxu1 %vm1412_vm0, %v1413_v4 }
 0x2cb   :  { %1298 = vmatprep.subr.bf16.mxu1 %v1411_v0 }
 0x2ce   :  { %1300 = vmatpush3.bf16.msra.mxu1 %v1462_v9 }
 0x2cf   :  { %1307 = vmatprep.subr.bf16.mxu1 %v1411_v0 }
 0x2d9   :  { %v95_v43 = vpop.permute.xlu0 %94 }
 0x2da   :  { %v126_v45 = vmul.f32 %v1485_v18, %v95_v43 }
 0x2dc   :  { %v134_v47 = vadd.f32 %v126_v45, %v82_v46 }
 0x2de   :  { %v146_v48 = vadd.f32 %v1492_v23, %v134_v47 }
 0x39c   :  { %v323_v49 = vpop.f32.mrb[0].mxu1 }
 0x39d   :  { %v327_v50 = vadd.f32 %v323_v49, %v146_v48  ;;  %v1199_v51 = vpop.f32.mrb[1].mxu1 }
 0x39f   :  { %1351 = vtanh.f32 %v327_v50  ;;  %v1114_v53 = vmul.f32 -1.442695, %v327_v50 }
 0x3a1   :  { %1353 = vpow2.f32 %v1114_v53 }
 0x3a9   :  { %v1352_v52 = vpop.eup %1351 }
 0x3aa   :  { %337 = vrot.lane.b32.xlu1 %v1352_v52, %s1416_s26 }
 0x3ab   :  { %v1354_v54 = vpop.eup %1353 }
 0x3ac   :  { %v331_v55 = vadd.f32 1.0, %v1354_v54  ;;  %v33_v54 = vld [vmem:[%s1643_s0 + $0x20] sm:$0xff] }
 0x3ae   :  { %1355 = vrcp.f32 %v331_v55 }
 0x3b8   :  { %v1356_v56 = vpop.eup %1355 }
 0x3b9   :  { %v335_v59 = vmul.f32 %v1356_v56, %v245_v37 }
 0x41c   :  { %v338_v57 = vpop.permute.xlu1 %337 }
 0x41d   :  { %v340_v58 = vmul.f32 %v1356_v56, %v338_v57 }
 0x41f   :  { %342 = vrot.lane.b32.xlu0 %v340_v58, %s1417_s27 }
 0x491   :  { %v343_v60 = vpop.permute.xlu0 %342 }
 0x492   :  { %v345_v61 = vadd.f32 %v343_v60, %v335_v59 }
 0x494   :  { %1357 = vtanh.f32 %v345_v61 }
 0x49e   :  { %v1358_v62 = vpop.eup %1357 }
 0x49f   :  { %348 = vrot.lane.b32.xlu1 %v1358_v62, %s1416_s26 }
 0x4a3   :  { %49 = vperm.xlu1 %1342, %v31_v63  }
 0x511   :  { %v349_v1 = vpop.permute.xlu1 %348 }
 0x512   :  { %v351_v2 = vmul.f32 %v1356_v56, %v349_v1 }
 0x514   :  { %353 = vrot.lane.b32.xlu0 %v351_v2, %s1417_s27 }
 0x518   :  { %98 = vperm.xlu0 %1341, %v31_v63  }
 0x522   :  { %v50_v7 = vpop.permute.xlu1 %49 }
 0x523   :  { %v83_v10 = vmul.f32 %v1483_v17, %v50_v7 }
 0x586   :  { %v354_v3 = vpop.permute.xlu0 %353 }
 0x587   :  { %1209 = vmatmul.mubr.msk.f32.vlgmr.msra.gmra.mrb[2].mxu0 %vm153_vm1, %v354_v3 }
 0x588   :  { %1303 = vmatpush3.bf16.msra.mxu0 %v1452_v5  ;;  %1230 = vmatprep.mubr.msk.f32.mxu0 %vm1412_vm0, %v1413_v4 }
 0x589   :  { %1304 = vmatprep.subr.bf16.mxu0 %v1411_v0 }
 0x58c   :  { %1306 = vmatpush3.bf16.msra.mxu0 %v1462_v9 }
 0x58d   :  { %1313 = vmatprep.subr.bf16.mxu0 %v1411_v0 }
 0x597   :  { %v99_v6 = vpop.permute.xlu0 %98 }
 0x598   :  { %v127_v8 = vmul.f32 %v1485_v18, %v99_v6 }
 0x59a   :  { %v135_v11 = vadd.f32 %v127_v8, %v83_v10 }
 0x59c   :  { %v147_v12 = vadd.f32 %v1492_v23, %v135_v11 }
 0x65a   :  { %v423_v13 = vpop.f32.mrb[2].mxu0 }
 0x65b   :  { %v427_v14 = vadd.f32 %v423_v13, %v147_v12  ;;  %v1210_v15 = vpop.f32.mrb[3].mxu0 }
 0x65d   :  { %1359 = vtanh.f32 %v427_v14  ;;  %v1116_v19 = vmul.f32 -1.442695, %v427_v14 }
 0x65f   :  { %1361 = vpow2.f32 %v1116_v19 }
 0x667   :  { %v1360_v16 = vpop.eup %1359 }
 0x668   :  { %437 = vrot.lane.b32.xlu1 %v1360_v16, %s1416_s26 }
 0x669   :  { %v1362_v20 = vpop.eup %1361 }
 0x66a   :  { %v431_v21 = vadd.f32 1.0, %v1362_v20  ;;  %v34_v20 = vld [vmem:[%s1643_s0 + $0x28] sm:$0xff] }
 0x66c   :  { %1363 = vrcp.f32 %v431_v21 }
 0x676   :  { %v1364_v22 = vpop.eup %1363 }
 0x677   :  { %v435_v26 = vmul.f32 %v1364_v22, %v345_v61 }
 0x6da   :  { %v438_v24 = vpop.permute.xlu1 %437 }
 0x6db   :  { %v440_v25 = vmul.f32 %v1364_v22, %v438_v24 }
 0x6dd   :  { %442 = vrot.lane.b32.xlu0 %v440_v25, %s1417_s27 }
 0x74f   :  { %v443_v27 = vpop.permute.xlu0 %442 }
 0x750   :  { %v445_v28 = vadd.f32 %v443_v27, %v435_v26 }
 0x752   :  { %1365 = vtanh.f32 %v445_v28 }
 0x75c   :  { %v1366_v29 = vpop.eup %1365 }
 0x75d   :  { %448 = vrot.lane.b32.xlu1 %v1366_v29, %s1416_s26 }
 0x761   :  { %54 = vperm.xlu1 %1342, %v32_v30  }
 0x7cf   :  { %v449_v31 = vpop.permute.xlu1 %448 }
 0x7d0   :  { %v451_v32 = vmul.f32 %v1364_v22, %v449_v31 }
 0x7d2   :  { %453 = vrot.lane.b32.xlu0 %v451_v32, %s1417_s27 }
 0x7d6   :  { %102 = vperm.xlu0 %1341, %v32_v30  }
 0x7e0   :  { %v55_v35 = vpop.permute.xlu1 %54 }
 0x7e1   :  { %v84_v37 = vmul.f32 %v1483_v17, %v55_v35 }
 0x844   :  { %v454_v33 = vpop.permute.xlu0 %453 }
 0x845   :  { %1220 = vmatmul.mubr.msk.f32.vlgmr.msra.gmra.mrb[2].mxu1 %vm153_vm1, %v454_v33 }
 0x846   :  { %1309 = vmatpush3.bf16.msra.mxu1 %v1452_v5  ;;  %1241 = vmatprep.mubr.msk.f32.mxu1 %vm1412_vm0, %v1413_v4 }
 0x847   :  { %1310 = vmatprep.subr.bf16.mxu1 %v1411_v0 }
 0x84a   :  { %1312 = vmatpush3.bf16.msra.mxu1 %v1462_v9 }
 0x84b   :  { %1319 = vmatprep.subr.bf16.mxu1 %v1411_v0 }
 0x855   :  { %v103_v34 = vpop.permute.xlu0 %102 }
 0x856   :  { %v128_v36 = vmul.f32 %v1485_v18, %v103_v34 }
 0x858   :  { %v136_v38 = vadd.f32 %v128_v36, %v84_v37 }
 0x85a   :  { %v148_v39 = vadd.f32 %v1492_v23, %v136_v38 }
 0x918   :  { %v523_v40 = vpop.f32.mrb[2].mxu1 }
 0x919   :  { %v527_v41 = vadd.f32 %v523_v40, %v148_v39  ;;  %v1221_v42 = vpop.f32.mrb[3].mxu1 }
 0x91b   :  { %1367 = vtanh.f32 %v527_v41  ;;  %v1118_v44 = vmul.f32 -1.442695, %v527_v41 }
 0x91d   :  { %1369 = vpow2.f32 %v1118_v44 }
 0x925   :  { %v1368_v43 = vpop.eup %1367 }
 0x926   :  { %537 = vrot.lane.b32.xlu1 %v1368_v43, %s1416_s26  ;;  %v35_v43 = vld [vmem:[%s1643_s0 + $0x30] sm:$0xff] }
 0x927   :  { %v1370_v45 = vpop.eup %1369 }
 0x928   :  { %v531_v46 = vadd.f32 1.0, %v1370_v45 }
 0x92a   :  { %1371 = vrcp.f32 %v531_v46 }
 0x934   :  { %v1372_v47 = vpop.eup %1371 }
 0x935   :  { %v535_v50 = vmul.f32 %v1372_v47, %v445_v28 }
 0x998   :  { %v538_v48 = vpop.permute.xlu1 %537 }
 0x999   :  { %v540_v49 = vmul.f32 %v1372_v47, %v538_v48 }
 0x99b   :  { %542 = vrot.lane.b32.xlu0 %v540_v49, %s1417_s27 }
 0xa0d   :  { %v543_v51 = vpop.permute.xlu0 %542 }
 0xa0e   :  { %v545_v52 = vadd.f32 %v543_v51, %v535_v50 }
 0xa10   :  { %1373 = vtanh.f32 %v545_v52 }
 0xa1a   :  { %v1374_v53 = vpop.eup %1373 }
 0xa1b   :  { %548 = vrot.lane.b32.xlu1 %v1374_v53, %s1416_s26 }
 0xa1f   :  { %59 = vperm.xlu1 %1342, %v33_v54  }
 0xa8d   :  { %v549_v55 = vpop.permute.xlu1 %548 }
 0xa8e   :  { %v551_v56 = vmul.f32 %v1372_v47, %v549_v55 }
 0xa90   :  { %553 = vrot.lane.b32.xlu0 %v551_v56, %s1417_s27 }
 0xa94   :  { %106 = vperm.xlu0 %1341, %v33_v54  }
 0xa9e   :  { %v60_v59 = vpop.permute.xlu1 %59 }
 0xa9f   :  { %v85_v61 = vmul.f32 %v1483_v17, %v60_v59 }
 0xb02   :  { %v554_v57 = vpop.permute.xlu0 %553 }
 0xb03   :  { %1231 = vmatmul.mubr.msk.f32.vlgmr.msra.gmra.mrb[4].mxu0 %vm153_vm1, %v554_v57 }
 0xb04   :  { %1315 = vmatpush3.bf16.msra.mxu0 %v1452_v5  ;;  %1252 = vmatprep.mubr.msk.f32.mxu0 %vm1412_vm0, %v1413_v4 }
 0xb05   :  { %1316 = vmatprep.subr.bf16.mxu0 %v1411_v0 }
 0xb08   :  { %1318 = vmatpush3.bf16.msra.mxu0 %v1462_v9 }
 0xb09   :  { %1325 = vmatprep.subr.bf16.mxu0 %v1411_v0 }
 0xb13   :  { %v107_v58 = vpop.permute.xlu0 %106 }
 0xb14   :  { %v129_v60 = vmul.f32 %v1485_v18, %v107_v58 }
 0xb16   :  { %v137_v62 = vadd.f32 %v129_v60, %v85_v61 }
 0xb18   :  { %v149_v63 = vadd.f32 %v1492_v23, %v137_v62 }
 0xbd6   :  { %v623_v1 = vpop.f32.mrb[4].mxu0 }
 0xbd7   :  { %v627_v2 = vadd.f32 %v623_v1, %v149_v63  ;;  %v1232_v3 = vpop.f32.mrb[5].mxu0 }
 0xbd8   :  { %v36_v3 = vld [vmem:[%s1643_s0 + $0x38] sm:$0xff] }
 0xbd9   :  { %1375 = vtanh.f32 %v627_v2  ;;  %v1120_v7 = vmul.f32 -1.442695, %v627_v2 }
 0xbdb   :  { %1377 = vpow2.f32 %v1120_v7 }
 0xbe3   :  { %v1376_v6 = vpop.eup %1375 }
 0xbe4   :  { %637 = vrot.lane.b32.xlu1 %v1376_v6, %s1416_s26 }
 0xbe5   :  { %v1378_v8 = vpop.eup %1377 }
 0xbe6   :  { %v631_v10 = vadd.f32 1.0, %v1378_v8 }
 0xbe8   :  { %1379 = vrcp.f32 %v631_v10 }
 0xbf2   :  { %v1380_v11 = vpop.eup %1379 }
 0xbf3   :  { %v635_v14 = vmul.f32 %v1380_v11, %v545_v52 }
 0xc56   :  { %v638_v12 = vpop.permute.xlu1 %637 }
 0xc57   :  { %v640_v13 = vmul.f32 %v1380_v11, %v638_v12 }
 0xc59   :  { %642 = vrot.lane.b32.xlu0 %v640_v13, %s1417_s27 }
 0xccb   :  { %v643_v15 = vpop.permute.xlu0 %642 }
 0xccc   :  { %v645_v16 = vadd.f32 %v643_v15, %v635_v14 }
 0xcce   :  { %1381 = vtanh.f32 %v645_v16 }
 0xcd8   :  { %v1382_v19 = vpop.eup %1381 }
 0xcd9   :  { %648 = vrot.lane.b32.xlu1 %v1382_v19, %s1416_s26 }
 0xcdd   :  { %64 = vperm.xlu1 %1342, %v34_v20  }
 0xd4b   :  { %v649_v21 = vpop.permute.xlu1 %648 }
 0xd4c   :  { %v651_v22 = vmul.f32 %v1380_v11, %v649_v21 }
 0xd4e   :  { %653 = vrot.lane.b32.xlu0 %v651_v22, %s1417_s27 }
 0xd52   :  { %110 = vperm.xlu0 %1341, %v34_v20  }
 0xd5c   :  { %v65_v26 = vpop.permute.xlu1 %64 }
 0xd5d   :  { %v86_v28 = vmul.f32 %v1483_v17, %v65_v26 }
 0xdc0   :  { %v654_v24 = vpop.permute.xlu0 %653 }
 0xdc1   :  { %1242 = vmatmul.mubr.msk.f32.vlgmr.msra.gmra.mrb[4].mxu1 %vm153_vm1, %v654_v24 }
 0xdc2   :  { %1321 = vmatpush3.bf16.msra.mxu1 %v1452_v5  ;;  %1263 = vmatprep.mubr.msk.f32.mxu1 %vm1412_vm0, %v1413_v4 }
 0xdc3   :  { %1322 = vmatprep.subr.bf16.mxu1 %v1411_v0 }
 0xdc6   :  { %1324 = vmatpush3.bf16.msra.mxu1 %v1462_v9 }
 0xdd1   :  { %v111_v25 = vpop.permute.xlu0 %110 }
 0xdd2   :  { %v130_v27 = vmul.f32 %v1485_v18, %v111_v25 }
 0xdd4   :  { %v138_v29 = vadd.f32 %v130_v27, %v86_v28 }
 0xdd6   :  { %v150_v30 = vadd.f32 %v1492_v23, %v138_v29  ;;  %v19_v29 = vld [vmem:[%s1642_s1 + $0x28] sm:$0xff] }
 0xe94   :  { %v723_v31 = vpop.f32.mrb[4].mxu1 }
 0xe95   :  { %v727_v32 = vadd.f32 %v723_v31, %v150_v30  ;;  %v1243_v33 = vpop.f32.mrb[5].mxu1  ;;  %v20_v30 = vld [vmem:[%s1642_s1 + $0x30] sm:$0xff]  ;;  %v21_v31 = vld [vmem:[%s1642_s1 + $0x38] sm:$0xff] }
 0xe96   :  { %v22_v33 = vld [vmem:[%s1642_s1 + $0x40] sm:$0xff] }
 0xe97   :  { %1383 = vtanh.f32 %v727_v32  ;;  %v1122_v34 = vmul.f32 -1.442695, %v727_v32  ;;  %v1326_v32 = vpack.c.bf16 %v20_v30, %v19_v29 }
 0xe99   :  { %1385 = vpow2.f32 %v1122_v34 }
 0xea1   :  { %v1384_v5 = vpop.eup %1383 }
 0xea2   :  { %737 = vrot.lane.b32.xlu1 %v1384_v5, %s1416_s26  ;;  %v1329_v5 = vpack.c.bf16 %v22_v33, %v21_v31 }
 0xea3   :  { %v1386_v35 = vpop.eup %1385 }
 0xea4   :  { %v731_v9 = vadd.f32 1.0, %v1386_v35 }
 0xea6   :  { %1387 = vrcp.f32 %v731_v9 }
 0xeb0   :  { %v1388_v36 = vpop.eup %1387 }
 0xeb1   :  { %v735_v39 = vmul.f32 %v1388_v36, %v645_v16 }
 0xf14   :  { %v738_v37 = vpop.permute.xlu1 %737 }
 0xf15   :  { %v740_v38 = vmul.f32 %v1388_v36, %v738_v37  ;;  %v1132_v37 = vld [vmem:[%s1644_s2 + $0x4] ss:$0 sm:$0xff] }
 0xf17   :  { %742 = vrot.lane.b32.xlu0 %v740_v38, %s1417_s27 }
 0xf89   :  { %v743_v40 = vpop.permute.xlu0 %742 }
 0xf8a   :  { %v745_v41 = vadd.f32 %v743_v40, %v735_v39 }
 0xf8c   :  { %1389 = vtanh.f32 %v745_v41 }
 0xf96   :  { %v1390_v42 = vpop.eup %1389 }
 0xf97   :  { %748 = vrot.lane.b32.xlu1 %v1390_v42, %s1416_s26 }
 0xf9b   :  { %69 = vperm.xlu1 %1342, %v35_v43  }
0x1009   :  { %v749_v44 = vpop.permute.xlu1 %748 }
0x100a   :  { %v751_v45 = vmul.f32 %v1388_v36, %v749_v44 }
0x100c   :  { %753 = vrot.lane.b32.xlu0 %v751_v45, %s1417_s27 }
0x1010   :  { %114 = vperm.xlu0 %1341, %v35_v43  }
0x101a   :  { %v70_v48 = vpop.permute.xlu1 %69 }
0x101b   :  { %v87_v50 = vmul.f32 %v1483_v17, %v70_v48 }
0x107e   :  { %v754_v46 = vpop.permute.xlu0 %753 }
0x107f   :  { %1253 = vmatmul.mubr.msk.f32.vlgmr.msra.gmra.mrb[6].mxu0 %vm153_vm1, %v754_v46 }
0x1080   :  { %1274 = vmatprep.mubr.msk.f32.mxu0 %vm1412_vm0, %v1413_v4  ;;  %1327 = vmatpush3.bf16.msra.mxu0 %v1326_v32 }
0x1081   :  { %1328 = vmatprep.subr.bf16.mxu0 %v1411_v0  ;;  %v1127_v0 = vld [vmem:[%s1644_s2 + $0x1] ss:$0 sm:$0xff] }
0x1084   :  { %1330 = vmatpush3.bf16.msra.mxu0 %v1329_v5 }
0x108f   :  { %v115_v47 = vpop.permute.xlu0 %114 }
0x1090   :  { %v131_v49 = vmul.f32 %v1485_v18, %v115_v47 }
0x1092   :  { %v139_v51 = vadd.f32 %v131_v49, %v87_v50 }
0x1094   :  { %v151_v52 = vadd.f32 %v1492_v23, %v139_v51 }
0x1152   :  { %v823_v53 = vpop.f32.mrb[6].mxu0 }
0x1153   :  { %v827_v54 = vadd.f32 %v823_v53, %v151_v52  ;;  %v1254_v55 = vpop.f32.mrb[7].mxu0 }
0x1155   :  { %1391 = vtanh.f32 %v827_v54  ;;  %v1124_v57 = vmul.f32 -1.442695, %v827_v54 }
0x1157   :  { %1393 = vpow2.f32 %v1124_v57 }
0x115f   :  { %v1392_v56 = vpop.eup %1391 }
0x1160   :  { %837 = vrot.lane.b32.xlu1 %v1392_v56, %s1416_s26 }
0x1161   :  { %v1394_v58 = vpop.eup %1393 }
0x1162   :  { %v831_v4 = vadd.f32 1.0, %v1394_v58 }
0x1164   :  { %1395 = vrcp.f32 %v831_v4  ;;  %v1129_v4 = vld [vmem:[%s1644_s2 + $0x2] ss:$0 sm:$0xff] }
0x116e   :  { %v1396_v59 = vpop.eup %1395 }
0x116f   :  { %v835_v62 = vmul.f32 %v1396_v59, %v745_v41 }
0x11d2   :  { %v838_v60 = vpop.permute.xlu1 %837 }
0x11d3   :  { %v840_v61 = vmul.f32 %v1396_v59, %v838_v60  ;;  %v1130_v60 = vld [vmem:[%s1644_s2 + $0x3] ss:$0 sm:$0xff] }
0x11d5   :  { %842 = vrot.lane.b32.xlu0 %v840_v61, %s1417_s27 }
0x1247   :  { %v843_v63 = vpop.permute.xlu0 %842 }
0x1248   :  { %v845_v1 = vadd.f32 %v843_v63, %v835_v62  ;;  %v1131_v63 = vld [vmem:[%s1642_s1 + $0x48] ss:$0 sm:$0xff] }
0x124a   :  { %1397 = vtanh.f32 %v845_v1 }
0x1254   :  { %v1398_v2 = vpop.eup %1397 }
0x1255   :  { %848 = vrot.lane.b32.xlu1 %v1398_v2, %s1416_s26 }
0x1259   :  { %74 = vperm.xlu1 %1342, %v36_v3  }
0x12c7   :  { %v849_v6 = vpop.permute.xlu1 %848 }
0x12c8   :  { %v851_v7 = vmul.f32 %v1396_v59, %v849_v6 }
0x12ca   :  { %853 = vrot.lane.b32.xlu0 %v851_v7, %s1417_s27 }
0x12ce   :  { %118 = vperm.xlu0 %1341, %v36_v3  }
0x12d8   :  { %v75_v11 = vpop.permute.xlu1 %74 }
0x12d9   :  { %v88_v13 = vmul.f32 %v1483_v17, %v75_v11 }
0x133c   :  { %v854_v8 = vpop.permute.xlu0 %853 }
0x133d   :  { %1264 = vmatmul.mubr.msk.f32.vlgmr.msra.gmra.mrb[6].mxu1 %vm153_vm1, %v854_v8 }
0x134d   :  { %v119_v10 = vpop.permute.xlu0 %118 }
0x134e   :  { %v132_v12 = vmul.f32 %v1485_v18, %v119_v10 }
0x1350   :  { %v140_v14 = vadd.f32 %v132_v12, %v88_v13 }
0x1352   :  { %v152_v15 = vadd.f32 %v1492_v23, %v140_v14 }
0x1410   :  { %v923_v16 = vpop.f32.mrb[6].mxu1 }
0x1411   :  { %v927_v19 = vadd.f32 %v923_v16, %v152_v15  ;;  %v1265_v20 = vpop.f32.mrb[7].mxu1 }
0x1413   :  { %1399 = vtanh.f32 %v927_v19  ;;  %v1126_v22 = vmul.f32 -1.442695, %v927_v19 }
0x1415   :  { %1401 = vpow2.f32 %v1126_v22 }
0x141d   :  { %v1400_v21 = vpop.eup %1399 }
0x141e   :  { %937 = vrot.lane.b32.xlu1 %v1400_v21, %s1416_s26 }
0x141f   :  { %v1402_v24 = vpop.eup %1401 }
0x1420   :  { %v931_v25 = vadd.f32 1.0, %v1402_v24 }
0x1422   :  { %1403 = vrcp.f32 %v931_v25 }
0x142c   :  { %v1404_v26 = vpop.eup %1403 }
0x142d   :  { %v935_v17 = vmul.f32 %v1404_v26, %v845_v1 }
0x1490   :  { %v938_v27 = vpop.permute.xlu1 %937 }
0x1491   :  { %v940_v18 = vmul.f32 %v1404_v26, %v938_v27 }
0x1493   :  { %942 = vrot.lane.b32.xlu0 %v940_v18, %s1417_s27 }
0x1505   :  { %v943_v28 = vpop.permute.xlu0 %942 }
0x1506   :  { %v945_v23 = vadd.f32 %v943_v28, %v935_v17 }
0x1508   :  { %1405 = vtanh.f32 %v945_v23 }
0x1512   :  { %v1406_v34 = vpop.eup %1405 }
0x1513   :  { %948 = vrot.lane.b32.xlu1 %v1406_v34, %s1416_s26 }
0x1585   :  { %v949_v35 = vpop.permute.xlu1 %948 }
0x1586   :  { %v951_v9 = vmul.f32 %v1404_v26, %v949_v35 }
0x1588   :  { %957 = vrot.lane.b32.xlu0 %v951_v9, %s1417_s27 }
0x158c   :  { %1097 = vrot.lane.b32.xlu0 %v1132_v37, %s1418_s24 }
0x1590   :  { %1101 = vrot.lane.b32.xlu0 %v1132_v37, %s1419_s25 }
0x15fa   :  { %v958_v36 = vpop.permute.xlu0 %957 }
0x15fb   :  { %1275 = vmatmul.mubr.msk.f32.vlgmr.msra.gmra.mrb[8].mxu0 %vm153_vm1, %v958_v36 }
0x15fe   :  { %v1098_v28 = vpop.permute.xlu0 %1097 }
0x1602   :  { %v1102_v30 = vpop.permute.xlu0 %1101 }
0x16ce   :  { %v1027_v38 = vpop.f32.mrb[8].mxu0 }
0x16cf   :  { %v1028_v39 = vadd.f32 %v1127_v0, %v1027_v38  ;;  %v1276_v40 = vpop.f32.mrb[9].mxu0 }
0x16d1   :  { %v1031_v41 = vrot.slane %v1028_v39, 4 }
0x16d3   :  { %v1032_v42 = vadd.f32 %v1031_v41, %v1028_v39 }
0x16d5   :  { %v1033_v43 = vrot.slane %v1032_v42, 2 }
0x16d7   :  { %v1034_v44 = vadd.f32 %v1033_v43, %v1032_v42 }
0x16d9   :  { %v1035_v45 = vrot.slane %v1034_v44, 1 }
0x16db   :  { %v1036_v46 = vadd.f32 %v1035_v45, %v1034_v44 }
0x16dd   :  { %v1038_v47 = vmul.f32 0.125, %v1036_v46 }
0x16df   :  { %v1039_v48 = vsub.f32 %v1028_v39, %v1038_v47 }
0x16e1   :  { %v1040_v49 = vmul.f32 %v1039_v48, %v1039_v48 }
0x16e3   :  { %v1041_v50 = vrot.slane %v1040_v49, 4 }
0x16e5   :  { %v1042_v51 = vadd.f32 %v1041_v50, %v1040_v49 }
0x16e7   :  { %v1043_v52 = vrot.slane %v1042_v51, 2 }
0x16e9   :  { %v1044_v53 = vadd.f32 %v1043_v52, %v1042_v51 }
0x16eb   :  { %v1045_v54 = vrot.slane %v1044_v53, 1 }
0x16ed   :  { %v1046_v55 = vadd.f32 %v1045_v54, %v1044_v53 }
0x16ef   :  { %v1047_v56 = vmul.f32 0.125, %v1046_v55 }
0x16f1   :  { %v1048_v57 = vadd.f32 1e-05, %v1047_v56 }
0x16f3   :  { %1407 = vrsqrt.f32 %v1048_v57 }
0x16fd   :  { %v1408_v58 = vpop.eup %1407 }
0x16fe   :  { %v1050_v59 = vmul.f32 %v1408_v58, %v1039_v48 }
0x1700   :  { %v1055_v61 = vmul.f32 %v1129_v4, %v1050_v59 }
0x1702   :  { %v1060_v62 = vadd.f32 %v1130_v60, %v1055_v61 }
0x1704   :  { %v1061_v1 = vmax.f32 %v1060_v62, 0.0 }
0x1706   :  { %v1066_v2 = vmul.f32 %v1131_v63, %v1061_v1 }
0x1708   :  { %1067 = vadd.xlane.f32.xlu1 %v1066_v2 }
0x1795   :  { %v1068_v3 = vpop.xlane.xlu1 %1067 }
0x1796   :  { %v1073_v6 = vadd.f32 %v1132_v37, %v1068_v3 }
0x1798   :  { %v1075_v7 = vsel %vm1074_vm2, %v1073_v6, 0.0 }
0x1799   :  { %v1076_v8 = vrot.slane %v1075_v7, 4 }
0x179b   :  { %v1077_v10 = vadd.f32 %v1076_v8, %v1075_v7 }
0x179d   :  { %v1078_v11 = vrot.slane %v1077_v10, 2 }
0x179f   :  { %v1079_v12 = vadd.f32 %v1078_v11, %v1077_v10 }
0x17a1   :  { %v1080_v13 = vrot.slane %v1079_v12, 1 }
0x17a3   :  { %v1081_v14 = vadd.f32 %v1080_v13, %v1079_v12 }
0x17a5   :  { %v1082_v15 = vmul.f32 0.125, %v1081_v14 }
0x17a7   :  { %v1083_v16 = vsub.f32 %v1073_v6, %v1082_v15 }
0x17a9   :  { %v1084_v19 = vmul.f32 %v1083_v16, %v1083_v16 }
0x17ab   :  { %v1085_v20 = vsel %vm1074_vm2, %v1084_v19, 0.0 }
0x17ac   :  { %v1086_v21 = vrot.slane %v1085_v20, 4 }
0x17ae   :  { %v1087_v22 = vadd.f32 %v1086_v21, %v1085_v20 }
0x17b0   :  { %v1088_v24 = vrot.slane %v1087_v22, 2 }
0x17b2   :  { %v1089_v25 = vadd.f32 %v1088_v24, %v1087_v22 }
0x17b4   :  { %v1090_v26 = vrot.slane %v1089_v25, 1 }
0x17b6   :  { %v1091_v27 = vadd.f32 %v1090_v26, %v1089_v25 }
0x17b8   :  { %v1092_v18 = vmul.f32 0.125, %v1091_v27 }
0x17ba   :  { %v1093_v17 = vadd.f32 1e-05, %v1092_v18 }
0x17bc   :  { %1409 = vrsqrt.f32 %v1093_v17 }
0x17c6   :  { %v1410_v23 = vpop.eup %1409 }
0x17c7   :  { %v1095_v29 = vmul.f32 %v1410_v23, %v1083_v16 }
0x17c9   :  { %v1100_v31 = vmul.f32 %v1098_v28, %v1095_v29 }
0x17cb   :  { %v1104_v32 = vadd.f32 %v1102_v30, %v1100_v31 }
0x17cd   :  { %v1105_v33 = vmax.f32 %v1104_v32, 0.0 }
0x17cf   :  { %1106 = vst.msk [vmem:[%s1645_s3] sm:$0xff] %vm1074_vm2, %v1105_v33 }

</bundles_post_ra>
